<compile_context>
chip_gen: v5e
topology: v5e:2x2
jax: 0.10.0
libtpu: 0.0.40
codegen_flags: <defaults>
</compile_context>

<pallas_src>
import functools

import jax
import jax.numpy as jnp
from jax.experimental import pallas as pl
from jax.experimental.pallas import tpu as pltpu


def _embed_kernel(ids_ref, wte_hbm, wpe_ref, out_ref, gbuf, sems, *,
                  tokens_per_tile, nbuf, seq_tokens):
    """One grid step = one (batch, seq_tile) pair = `tokens_per_tile` tokens.

    ids_ref : (batch*seq_tokens,) int32 in SMEM (scalar prefetch, flattened 1-D)
    wte_hbm : (vocab, hidden) raw HBM ref (memory_space=pl.ANY)
    wpe_ref : (T, hidden) VMEM tile of position embeddings for this seq tile
    out_ref : (T, hidden) VMEM view of output[b, s*T:(s+1)*T, :]
    gbuf    : (T, hidden) VMEM staging buffer for gathered wte rows
    sems    : (nbuf,) DMA semaphores -> up to nbuf gather DMAs in flight
    """
    b = pl.program_id(0)
    s = pl.program_id(1)
    base = b * seq_tokens + s * tokens_per_tile

    def start(t):
        row = ids_ref[base + t]
        pltpu.make_async_copy(
            wte_hbm.at[pl.ds(row, 1), :],
            gbuf.at[pl.ds(t, 1), :],
            sems.at[t % nbuf],
        ).start()

    def wait(t):
        # src slice is only a shape placeholder; the wait is on the semaphore.
        pltpu.make_async_copy(
            wte_hbm.at[pl.ds(0, 1), :],
            gbuf.at[pl.ds(t, 1), :],
            sems.at[t % nbuf],
        ).wait()

    # Prime up to `nbuf` outstanding row gathers, then wave through the tile.
    for t in range(min(nbuf, tokens_per_tile)):
        start(t)
    for t in range(tokens_per_tile):
        wait(t)
        nxt = t + nbuf
        if nxt < tokens_per_tile:
            start(nxt)

    out_ref[...] = (gbuf[...].astype(jnp.float32)
                    + wpe_ref[...].astype(jnp.float32)).astype(out_ref.dtype)


def _round_up(x, m):
    return (x + m - 1) // m * m


def _pick_tile(seq_padded, max_tile):
    """Largest multiple of 8 that divides seq_padded and is <= max_tile."""
    best = 8
    t = 16
    while t <= min(seq_padded, max_tile):
        if seq_padded % t == 0:
            best = t
        t += 8
    return best


@functools.partial(jax.jit, static_argnames=("max_tokens_per_tile", "max_inflight"))
def gpt2_embedding(input_ids, wte, wpe, *, max_tokens_per_tile=256,
                   max_inflight=16):
    """input_ids: (..., seq) int; wte: (V, H); wpe: (P, H). Returns (..., seq, H)."""
    input_shape = input_ids.shape
    seq = input_shape[-1]
    vocab, hidden = wte.shape

    ids2d = input_ids.reshape(-1, seq).astype(jnp.int32)   # view(-1, seq)
    batch = ids2d.shape[0]

    # Clamp ids so an out-of-range id cannot drive an OOB HBM gather.
    ids2d = jnp.clip(ids2d, 0, vocab - 1)

    # Pad the token axis to a multiple of 8 so tiles are sublane-aligned.
    seq_p = _round_up(seq, 8)
    if seq_p != seq:
        ids2d = jnp.pad(ids2d, ((0, 0), (0, seq_p - seq)))
    if wpe.shape[0] < seq_p:
        wpe = jnp.pad(wpe, ((0, seq_p - wpe.shape[0]), (0, 0)))

    tile = _pick_tile(seq_p, max_tokens_per_tile)
    nbuf = max(1, min(tile, max_inflight))
    seq_tiles = seq_p // tile

    ids_flat = ids2d.reshape(-1)                            # 1-D SMEM prefetch
    out_dtype = jnp.result_type(wte.dtype, wpe.dtype)

    kernel = functools.partial(
        _embed_kernel, tokens_per_tile=tile, nbuf=nbuf, seq_tokens=seq_p)

    grid_spec = pltpu.PrefetchScalarGridSpec(
        num_scalar_prefetch=1,
        grid=(batch, seq_tiles),
        in_specs=[
            # token-embedding table: stays in HBM, gathered manually per row
            pl.BlockSpec(memory_space=pl.ANY),
            # position-embedding tile: contiguous (T, H), reused across batch
            pl.BlockSpec((tile, hidden), lambda b, s, ids: (s, 0)),
        ],
        # dense, (8,128)-aligned output tile (batch dim squeezed)
        out_specs=pl.BlockSpec((None, tile, hidden), lambda b, s, ids: (b, s, 0)),
        scratch_shapes=[
            pltpu.VMEM((tile, hidden), wte.dtype),      # gathered wte rows
            pltpu.SemaphoreType.DMA((nbuf,)),           # in-flight gather sems
        ],
    )

    out = pl.pallas_call(
        kernel,
        out_shape=jax.ShapeDtypeStruct((batch, seq_p, hidden), out_dtype),
        grid_spec=grid_spec,
        compiler_params=pltpu.CompilerParams(
            dimension_semantics=("parallel", "parallel"),
        ),
    )(ids_flat, wte, wpe)

    out = out[:, :seq, :]
    return out.reshape(*input_shape, hidden)


def _reference(input_ids, wte, wpe):
    seq = input_ids.shape[-1]
    ids2d = input_ids.reshape(-1, seq)
    pos = jnp.arange(seq)
    h = jnp.take(wte, ids2d, axis=0) + jnp.take(wpe, pos, axis=0)[None]
    return h.reshape(*input_ids.shape, wte.shape[-1])


if __name__ == "__main__":
    # Deterministic small config consistent with GPT-2 embeddings.
    vocab_size = 256
    max_positions = 64
    hidden = 128
    batch, seq = 2, 8

    key = jax.random.PRNGKey(0)
    k_ids, k_wte, k_wpe = jax.random.split(key, 3)

    input_ids = jax.random.randint(k_ids, (batch, seq), 0, vocab_size, dtype=jnp.int32)
    wte = jax.random.normal(k_wte, (vocab_size, hidden), dtype=jnp.float32) * 0.02
    wpe = jax.random.normal(k_wpe, (max_positions, hidden), dtype=jnp.float32) * 0.01

    out = gpt2_embedding(input_ids, wte, wpe)
    out = jax.block_until_ready(out)

    ref = _reference(input_ids, wte, wpe)
    assert out.shape == (batch, seq, hidden), out.shape
    assert out.dtype == jnp.float32
    assert jnp.allclose(out, ref, atol=1e-6, rtol=1e-6), "mismatch vs reference"

    print("KERNEL_OK")
</pallas_src>

<mosaic_0001>
module attributes {stable_mosaic.version = 11 : i64} {
  func.func @_embed_kernel(%arg0: i32, %arg1: i32, %arg2: memref<16xi32, #tpu.memory_space<smem>>, %arg3: memref<256x128xf32, #tpu.memory_space<any>>, %arg4: memref<8x128xf32, #tpu.memory_space<vmem>>, %arg5: memref<1x8x128xf32, #tpu.memory_space<vmem>>, %arg6: memref<8x128xf32, #tpu.memory_space<vmem>>, %arg7: memref<8x!tpu.dma_semaphore, #tpu.memory_space<semaphore_mem>>) attributes {dimension_semantics = [#tpu.dimension_semantics<parallel>, #tpu.dimension_semantics<parallel>], iteration_bounds = array<i64: 2, 1>, scalar_prefetch = 1 : i64, scratch_operands = 2 : i64, tpu.core_type = #tpu.core_type<tc>, window_params = [{}, {transform_indices = @transform_1, window_bounds = array<i64: 8, 128>}, {transform_indices = @transform_2, window_bounds = array<i64: 1, 8, 128>}]} {
    %c8_i32 = arith.constant 8 : i32
    %0 = arith.muli %arg0, %c8_i32 : i32
    %c8_i32_0 = arith.constant 8 : i32
    %1 = arith.muli %arg1, %c8_i32_0 : i32
    %2 = arith.addi %0, %1 : i32
    %c0_i32 = arith.constant 0 : i32
    %3 = arith.addi %2, %c0_i32 : i32
    %4 = arith.index_cast %3 : i32 to index
    %5 = memref.load %arg2[%4] : memref<16xi32, #tpu.memory_space<smem>>
    %c0_i32_1 = arith.constant 0 : i32
    %c0_i32_2 = arith.constant 0 : i32
    %6 = tpu.memref_slice %arg3[%5, %c0_i32_2] : memref<256x128xf32, #tpu.memory_space<any>> -> memref<1x128xf32, #tpu.memory_space<any>>
    %c0_i32_3 = arith.constant 0 : i32
    %c0_i32_4 = arith.constant 0 : i32
    %7 = tpu.memref_slice %arg6[%c0_i32_3, %c0_i32_4] : memref<8x128xf32, #tpu.memory_space<vmem>> -> memref<1x128xf32, #tpu.memory_space<vmem>>
    %8 = tpu.memref_slice %arg7[%c0_i32_1] : memref<8x!tpu.dma_semaphore, #tpu.memory_space<semaphore_mem>> -> memref<1x!tpu.dma_semaphore, #tpu.memory_space<semaphore_mem>>
    %9 = tpu.memref_squeeze %8 : memref<1x!tpu.dma_semaphore, #tpu.memory_space<semaphore_mem>> -> memref<!tpu.dma_semaphore, #tpu.memory_space<semaphore_mem>>
    tpu.enqueue_dma source(%6 : memref<1x128xf32, #tpu.memory_space<any>>) target(%7 : memref<1x128xf32, #tpu.memory_space<vmem>>) target_semaphore(%9 : memref<!tpu.dma_semaphore, #tpu.memory_space<semaphore_mem>>)
    %c1_i32 = arith.constant 1 : i32
    %10 = arith.addi %2, %c1_i32 : i32
    %11 = arith.index_cast %10 : i32 to index
    %12 = memref.load %arg2[%11] : memref<16xi32, #tpu.memory_space<smem>>
    %c1_i32_5 = arith.constant 1 : i32
    %c0_i32_6 = arith.constant 0 : i32
    %13 = tpu.memref_slice %arg3[%12, %c0_i32_6] : memref<256x128xf32, #tpu.memory_space<any>> -> memref<1x128xf32, #tpu.memory_space<any>>
    %c1_i32_7 = arith.constant 1 : i32
    %c0_i32_8 = arith.constant 0 : i32
    %14 = tpu.memref_slice %arg6[%c1_i32_7, %c0_i32_8] : memref<8x128xf32, #tpu.memory_space<vmem>> -> memref<1x128xf32, #tpu.memory_space<vmem>>
    %15 = tpu.memref_slice %arg7[%c1_i32_5] : memref<8x!tpu.dma_semaphore, #tpu.memory_space<semaphore_mem>> -> memref<1x!tpu.dma_semaphore, #tpu.memory_space<semaphore_mem>>
    %16 = tpu.memref_squeeze %15 : memref<1x!tpu.dma_semaphore, #tpu.memory_space<semaphore_mem>> -> memref<!tpu.dma_semaphore, #tpu.memory_space<semaphore_mem>>
    tpu.enqueue_dma source(%13 : memref<1x128xf32, #tpu.memory_space<any>>) target(%14 : memref<1x128xf32, #tpu.memory_space<vmem>>) target_semaphore(%16 : memref<!tpu.dma_semaphore, #tpu.memory_space<semaphore_mem>>)
    %c2_i32 = arith.constant 2 : i32
    %17 = arith.addi %2, %c2_i32 : i32
    %18 = arith.index_cast %17 : i32 to index
    %19 = memref.load %arg2[%18] : memref<16xi32, #tpu.memory_space<smem>>
    %c2_i32_9 = arith.constant 2 : i32
    %c0_i32_10 = arith.constant 0 : i32
    %20 = tpu.memref_slice %arg3[%19, %c0_i32_10] : memref<256x128xf32, #tpu.memory_space<any>> -> memref<1x128xf32, #tpu.memory_space<any>>
    %c2_i32_11 = arith.constant 2 : i32
    %c0_i32_12 = arith.constant 0 : i32
    %21 = tpu.memref_slice %arg6[%c2_i32_11, %c0_i32_12] : memref<8x128xf32, #tpu.memory_space<vmem>> -> memref<1x128xf32, #tpu.memory_space<vmem>>
    %22 = tpu.memref_slice %arg7[%c2_i32_9] : memref<8x!tpu.dma_semaphore, #tpu.memory_space<semaphore_mem>> -> memref<1x!tpu.dma_semaphore, #tpu.memory_space<semaphore_mem>>
    %23 = tpu.memref_squeeze %22 : memref<1x!tpu.dma_semaphore, #tpu.memory_space<semaphore_mem>> -> memref<!tpu.dma_semaphore, #tpu.memory_space<semaphore_mem>>
    tpu.enqueue_dma source(%20 : memref<1x128xf32, #tpu.memory_space<any>>) target(%21 : memref<1x128xf32, #tpu.memory_space<vmem>>) target_semaphore(%23 : memref<!tpu.dma_semaphore, #tpu.memory_space<semaphore_mem>>)
    %c3_i32 = arith.constant 3 : i32
    %24 = arith.addi %2, %c3_i32 : i32
    %25 = arith.index_cast %24 : i32 to index
    %26 = memref.load %arg2[%25] : memref<16xi32, #tpu.memory_space<smem>>
    %c3_i32_13 = arith.constant 3 : i32
    %c0_i32_14 = arith.constant 0 : i32
    %27 = tpu.memref_slice %arg3[%26, %c0_i32_14] : memref<256x128xf32, #tpu.memory_space<any>> -> memref<1x128xf32, #tpu.memory_space<any>>
    %c3_i32_15 = arith.constant 3 : i32
    %c0_i32_16 = arith.constant 0 : i32
    %28 = tpu.memref_slice %arg6[%c3_i32_15, %c0_i32_16] : memref<8x128xf32, #tpu.memory_space<vmem>> -> memref<1x128xf32, #tpu.memory_space<vmem>>
    %29 = tpu.memref_slice %arg7[%c3_i32_13] : memref<8x!tpu.dma_semaphore, #tpu.memory_space<semaphore_mem>> -> memref<1x!tpu.dma_semaphore, #tpu.memory_space<semaphore_mem>>
    %30 = tpu.memref_squeeze %29 : memref<1x!tpu.dma_semaphore, #tpu.memory_space<semaphore_mem>> -> memref<!tpu.dma_semaphore, #tpu.memory_space<semaphore_mem>>
    tpu.enqueue_dma source(%27 : memref<1x128xf32, #tpu.memory_space<any>>) target(%28 : memref<1x128xf32, #tpu.memory_space<vmem>>) target_semaphore(%30 : memref<!tpu.dma_semaphore, #tpu.memory_space<semaphore_mem>>)
    %c4_i32 = arith.constant 4 : i32
    %31 = arith.addi %2, %c4_i32 : i32
    %32 = arith.index_cast %31 : i32 to index
    %33 = memref.load %arg2[%32] : memref<16xi32, #tpu.memory_space<smem>>
    %c4_i32_17 = arith.constant 4 : i32
    %c0_i32_18 = arith.constant 0 : i32
    %34 = tpu.memref_slice %arg3[%33, %c0_i32_18] : memref<256x128xf32, #tpu.memory_space<any>> -> memref<1x128xf32, #tpu.memory_space<any>>
    %c4_i32_19 = arith.constant 4 : i32
    %c0_i32_20 = arith.constant 0 : i32
    %35 = tpu.memref_slice %arg6[%c4_i32_19, %c0_i32_20] : memref<8x128xf32, #tpu.memory_space<vmem>> -> memref<1x128xf32, #tpu.memory_space<vmem>>
    %36 = tpu.memref_slice %arg7[%c4_i32_17] : memref<8x!tpu.dma_semaphore, #tpu.memory_space<semaphore_mem>> -> memref<1x!tpu.dma_semaphore, #tpu.memory_space<semaphore_mem>>
    %37 = tpu.memref_squeeze %36 : memref<1x!tpu.dma_semaphore, #tpu.memory_space<semaphore_mem>> -> memref<!tpu.dma_semaphore, #tpu.memory_space<semaphore_mem>>
    tpu.enqueue_dma source(%34 : memref<1x128xf32, #tpu.memory_space<any>>) target(%35 : memref<1x128xf32, #tpu.memory_space<vmem>>) target_semaphore(%37 : memref<!tpu.dma_semaphore, #tpu.memory_space<semaphore_mem>>)
    %c5_i32 = arith.constant 5 : i32
    %38 = arith.addi %2, %c5_i32 : i32
    %39 = arith.index_cast %38 : i32 to index
    %40 = memref.load %arg2[%39] : memref<16xi32, #tpu.memory_space<smem>>
    %c5_i32_21 = arith.constant 5 : i32
    %c0_i32_22 = arith.constant 0 : i32
    %41 = tpu.memref_slice %arg3[%40, %c0_i32_22] : memref<256x128xf32, #tpu.memory_space<any>> -> memref<1x128xf32, #tpu.memory_space<any>>
    %c5_i32_23 = arith.constant 5 : i32
    %c0_i32_24 = arith.constant 0 : i32
    %42 = tpu.memref_slice %arg6[%c5_i32_23, %c0_i32_24] : memref<8x128xf32, #tpu.memory_space<vmem>> -> memref<1x128xf32, #tpu.memory_space<vmem>>
    %43 = tpu.memref_slice %arg7[%c5_i32_21] : memref<8x!tpu.dma_semaphore, #tpu.memory_space<semaphore_mem>> -> memref<1x!tpu.dma_semaphore, #tpu.memory_space<semaphore_mem>>
    %44 = tpu.memref_squeeze %43 : memref<1x!tpu.dma_semaphore, #tpu.memory_space<semaphore_mem>> -> memref<!tpu.dma_semaphore, #tpu.memory_space<semaphore_mem>>
    tpu.enqueue_dma source(%41 : memref<1x128xf32, #tpu.memory_space<any>>) target(%42 : memref<1x128xf32, #tpu.memory_space<vmem>>) target_semaphore(%44 : memref<!tpu.dma_semaphore, #tpu.memory_space<semaphore_mem>>)
    %c6_i32 = arith.constant 6 : i32
    %45 = arith.addi %2, %c6_i32 : i32
    %46 = arith.index_cast %45 : i32 to index
    %47 = memref.load %arg2[%46] : memref<16xi32, #tpu.memory_space<smem>>
    %c6_i32_25 = arith.constant 6 : i32
    %c0_i32_26 = arith.constant 0 : i32
    %48 = tpu.memref_slice %arg3[%47, %c0_i32_26] : memref<256x128xf32, #tpu.memory_space<any>> -> memref<1x128xf32, #tpu.memory_space<any>>
    %c6_i32_27 = arith.constant 6 : i32
    %c0_i32_28 = arith.constant 0 : i32
    %49 = tpu.memref_slice %arg6[%c6_i32_27, %c0_i32_28] : memref<8x128xf32, #tpu.memory_space<vmem>> -> memref<1x128xf32, #tpu.memory_space<vmem>>
    %50 = tpu.memref_slice %arg7[%c6_i32_25] : memref<8x!tpu.dma_semaphore, #tpu.memory_space<semaphore_mem>> -> memref<1x!tpu.dma_semaphore, #tpu.memory_space<semaphore_mem>>
    %51 = tpu.memref_squeeze %50 : memref<1x!tpu.dma_semaphore, #tpu.memory_space<semaphore_mem>> -> memref<!tpu.dma_semaphore, #tpu.memory_space<semaphore_mem>>
    tpu.enqueue_dma source(%48 : memref<1x128xf32, #tpu.memory_space<any>>) target(%49 : memref<1x128xf32, #tpu.memory_space<vmem>>) target_semaphore(%51 : memref<!tpu.dma_semaphore, #tpu.memory_space<semaphore_mem>>)
    %c7_i32 = arith.constant 7 : i32
    %52 = arith.addi %2, %c7_i32 : i32
    %53 = arith.index_cast %52 : i32 to index
    %54 = memref.load %arg2[%53] : memref<16xi32, #tpu.memory_space<smem>>
    %c7_i32_29 = arith.constant 7 : i32
    %c0_i32_30 = arith.constant 0 : i32
    %55 = tpu.memref_slice %arg3[%54, %c0_i32_30] : memref<256x128xf32, #tpu.memory_space<any>> -> memref<1x128xf32, #tpu.memory_space<any>>
    %c7_i32_31 = arith.constant 7 : i32
    %c0_i32_32 = arith.constant 0 : i32
    %56 = tpu.memref_slice %arg6[%c7_i32_31, %c0_i32_32] : memref<8x128xf32, #tpu.memory_space<vmem>> -> memref<1x128xf32, #tpu.memory_space<vmem>>
    %57 = tpu.memref_slice %arg7[%c7_i32_29] : memref<8x!tpu.dma_semaphore, #tpu.memory_space<semaphore_mem>> -> memref<1x!tpu.dma_semaphore, #tpu.memory_space<semaphore_mem>>
    %58 = tpu.memref_squeeze %57 : memref<1x!tpu.dma_semaphore, #tpu.memory_space<semaphore_mem>> -> memref<!tpu.dma_semaphore, #tpu.memory_space<semaphore_mem>>
    tpu.enqueue_dma source(%55 : memref<1x128xf32, #tpu.memory_space<any>>) target(%56 : memref<1x128xf32, #tpu.memory_space<vmem>>) target_semaphore(%58 : memref<!tpu.dma_semaphore, #tpu.memory_space<semaphore_mem>>)
    %c0_i32_33 = arith.constant 0 : i32
    %c0_i32_34 = arith.constant 0 : i32
    %c0_i32_35 = arith.constant 0 : i32
    %59 = tpu.memref_slice %arg3[%c0_i32_34, %c0_i32_35] : memref<256x128xf32, #tpu.memory_space<any>> -> memref<1x128xf32, #tpu.memory_space<any>>
    %c0_i32_36 = arith.constant 0 : i32
    %c0_i32_37 = arith.constant 0 : i32
    %60 = tpu.memref_slice %arg6[%c0_i32_36, %c0_i32_37] : memref<8x128xf32, #tpu.memory_space<vmem>> -> memref<1x128xf32, #tpu.memory_space<vmem>>
    %61 = tpu.memref_slice %arg7[%c0_i32_33] : memref<8x!tpu.dma_semaphore, #tpu.memory_space<semaphore_mem>> -> memref<1x!tpu.dma_semaphore, #tpu.memory_space<semaphore_mem>>
    %62 = tpu.memref_squeeze %61 : memref<1x!tpu.dma_semaphore, #tpu.memory_space<semaphore_mem>> -> memref<!tpu.dma_semaphore, #tpu.memory_space<semaphore_mem>>
    tpu.wait_dma2 semaphore(%62 : memref<!tpu.dma_semaphore, #tpu.memory_space<semaphore_mem>>) src(%59 : memref<1x128xf32, #tpu.memory_space<any>>) dst(%60 : memref<1x128xf32, #tpu.memory_space<vmem>>)
    %c1_i32_38 = arith.constant 1 : i32
    %c0_i32_39 = arith.constant 0 : i32
    %c0_i32_40 = arith.constant 0 : i32
    %63 = tpu.memref_slice %arg3[%c0_i32_39, %c0_i32_40] : memref<256x128xf32, #tpu.memory_space<any>> -> memref<1x128xf32, #tpu.memory_space<any>>
    %c1_i32_41 = arith.constant 1 : i32
    %c0_i32_42 = arith.constant 0 : i32
    %64 = tpu.memref_slice %arg6[%c1_i32_41, %c0_i32_42] : memref<8x128xf32, #tpu.memory_space<vmem>> -> memref<1x128xf32, #tpu.memory_space<vmem>>
    %65 = tpu.memref_slice %arg7[%c1_i32_38] : memref<8x!tpu.dma_semaphore, #tpu.memory_space<semaphore_mem>> -> memref<1x!tpu.dma_semaphore, #tpu.memory_space<semaphore_mem>>
    %66 = tpu.memref_squeeze %65 : memref<1x!tpu.dma_semaphore, #tpu.memory_space<semaphore_mem>> -> memref<!tpu.dma_semaphore, #tpu.memory_space<semaphore_mem>>
    tpu.wait_dma2 semaphore(%66 : memref<!tpu.dma_semaphore, #tpu.memory_space<semaphore_mem>>) src(%63 : memref<1x128xf32, #tpu.memory_space<any>>) dst(%64 : memref<1x128xf32, #tpu.memory_space<vmem>>)
    %c2_i32_43 = arith.constant 2 : i32
    %c0_i32_44 = arith.constant 0 : i32
    %c0_i32_45 = arith.constant 0 : i32
    %67 = tpu.memref_slice %arg3[%c0_i32_44, %c0_i32_45] : memref<256x128xf32, #tpu.memory_space<any>> -> memref<1x128xf32, #tpu.memory_space<any>>
    %c2_i32_46 = arith.constant 2 : i32
    %c0_i32_47 = arith.constant 0 : i32
    %68 = tpu.memref_slice %arg6[%c2_i32_46, %c0_i32_47] : memref<8x128xf32, #tpu.memory_space<vmem>> -> memref<1x128xf32, #tpu.memory_space<vmem>>
    %69 = tpu.memref_slice %arg7[%c2_i32_43] : memref<8x!tpu.dma_semaphore, #tpu.memory_space<semaphore_mem>> -> memref<1x!tpu.dma_semaphore, #tpu.memory_space<semaphore_mem>>
    %70 = tpu.memref_squeeze %69 : memref<1x!tpu.dma_semaphore, #tpu.memory_space<semaphore_mem>> -> memref<!tpu.dma_semaphore, #tpu.memory_space<semaphore_mem>>
    tpu.wait_dma2 semaphore(%70 : memref<!tpu.dma_semaphore, #tpu.memory_space<semaphore_mem>>) src(%67 : memref<1x128xf32, #tpu.memory_space<any>>) dst(%68 : memref<1x128xf32, #tpu.memory_space<vmem>>)
    %c3_i32_48 = arith.constant 3 : i32
    %c0_i32_49 = arith.constant 0 : i32
    %c0_i32_50 = arith.constant 0 : i32
    %71 = tpu.memref_slice %arg3[%c0_i32_49, %c0_i32_50] : memref<256x128xf32, #tpu.memory_space<any>> -> memref<1x128xf32, #tpu.memory_space<any>>
    %c3_i32_51 = arith.constant 3 : i32
    %c0_i32_52 = arith.constant 0 : i32
    %72 = tpu.memref_slice %arg6[%c3_i32_51, %c0_i32_52] : memref<8x128xf32, #tpu.memory_space<vmem>> -> memref<1x128xf32, #tpu.memory_space<vmem>>
    %73 = tpu.memref_slice %arg7[%c3_i32_48] : memref<8x!tpu.dma_semaphore, #tpu.memory_space<semaphore_mem>> -> memref<1x!tpu.dma_semaphore, #tpu.memory_space<semaphore_mem>>
    %74 = tpu.memref_squeeze %73 : memref<1x!tpu.dma_semaphore, #tpu.memory_space<semaphore_mem>> -> memref<!tpu.dma_semaphore, #tpu.memory_space<semaphore_mem>>
    tpu.wait_dma2 semaphore(%74 : memref<!tpu.dma_semaphore, #tpu.memory_space<semaphore_mem>>) src(%71 : memref<1x128xf32, #tpu.memory_space<any>>) dst(%72 : memref<1x128xf32, #tpu.memory_space<vmem>>)
    %c4_i32_53 = arith.constant 4 : i32
    %c0_i32_54 = arith.constant 0 : i32
    %c0_i32_55 = arith.constant 0 : i32
    %75 = tpu.memref_slice %arg3[%c0_i32_54, %c0_i32_55] : memref<256x128xf32, #tpu.memory_space<any>> -> memref<1x128xf32, #tpu.memory_space<any>>
    %c4_i32_56 = arith.constant 4 : i32
    %c0_i32_57 = arith.constant 0 : i32
    %76 = tpu.memref_slice %arg6[%c4_i32_56, %c0_i32_57] : memref<8x128xf32, #tpu.memory_space<vmem>> -> memref<1x128xf32, #tpu.memory_space<vmem>>
    %77 = tpu.memref_slice %arg7[%c4_i32_53] : memref<8x!tpu.dma_semaphore, #tpu.memory_space<semaphore_mem>> -> memref<1x!tpu.dma_semaphore, #tpu.memory_space<semaphore_mem>>
    %78 = tpu.memref_squeeze %77 : memref<1x!tpu.dma_semaphore, #tpu.memory_space<semaphore_mem>> -> memref<!tpu.dma_semaphore, #tpu.memory_space<semaphore_mem>>
    tpu.wait_dma2 semaphore(%78 : memref<!tpu.dma_semaphore, #tpu.memory_space<semaphore_mem>>) src(%75 : memref<1x128xf32, #tpu.memory_space<any>>) dst(%76 : memref<1x128xf32, #tpu.memory_space<vmem>>)
    %c5_i32_58 = arith.constant 5 : i32
    %c0_i32_59 = arith.constant 0 : i32
    %c0_i32_60 = arith.constant 0 : i32
    %79 = tpu.memref_slice %arg3[%c0_i32_59, %c0_i32_60] : memref<256x128xf32, #tpu.memory_space<any>> -> memref<1x128xf32, #tpu.memory_space<any>>
    %c5_i32_61 = arith.constant 5 : i32
    %c0_i32_62 = arith.constant 0 : i32
    %80 = tpu.memref_slice %arg6[%c5_i32_61, %c0_i32_62] : memref<8x128xf32, #tpu.memory_space<vmem>> -> memref<1x128xf32, #tpu.memory_space<vmem>>
    %81 = tpu.memref_slice %arg7[%c5_i32_58] : memref<8x!tpu.dma_semaphore, #tpu.memory_space<semaphore_mem>> -> memref<1x!tpu.dma_semaphore, #tpu.memory_space<semaphore_mem>>
    %82 = tpu.memref_squeeze %81 : memref<1x!tpu.dma_semaphore, #tpu.memory_space<semaphore_mem>> -> memref<!tpu.dma_semaphore, #tpu.memory_space<semaphore_mem>>
    tpu.wait_dma2 semaphore(%82 : memref<!tpu.dma_semaphore, #tpu.memory_space<semaphore_mem>>) src(%79 : memref<1x128xf32, #tpu.memory_space<any>>) dst(%80 : memref<1x128xf32, #tpu.memory_space<vmem>>)
    %c6_i32_63 = arith.constant 6 : i32
    %c0_i32_64 = arith.constant 0 : i32
    %c0_i32_65 = arith.constant 0 : i32
    %83 = tpu.memref_slice %arg3[%c0_i32_64, %c0_i32_65] : memref<256x128xf32, #tpu.memory_space<any>> -> memref<1x128xf32, #tpu.memory_space<any>>
    %c6_i32_66 = arith.constant 6 : i32
    %c0_i32_67 = arith.constant 0 : i32
    %84 = tpu.memref_slice %arg6[%c6_i32_66, %c0_i32_67] : memref<8x128xf32, #tpu.memory_space<vmem>> -> memref<1x128xf32, #tpu.memory_space<vmem>>
    %85 = tpu.memref_slice %arg7[%c6_i32_63] : memref<8x!tpu.dma_semaphore, #tpu.memory_space<semaphore_mem>> -> memref<1x!tpu.dma_semaphore, #tpu.memory_space<semaphore_mem>>
    %86 = tpu.memref_squeeze %85 : memref<1x!tpu.dma_semaphore, #tpu.memory_space<semaphore_mem>> -> memref<!tpu.dma_semaphore, #tpu.memory_space<semaphore_mem>>
    tpu.wait_dma2 semaphore(%86 : memref<!tpu.dma_semaphore, #tpu.memory_space<semaphore_mem>>) src(%83 : memref<1x128xf32, #tpu.memory_space<any>>) dst(%84 : memref<1x128xf32, #tpu.memory_space<vmem>>)
    %c7_i32_68 = arith.constant 7 : i32
    %c0_i32_69 = arith.constant 0 : i32
    %c0_i32_70 = arith.constant 0 : i32
    %87 = tpu.memref_slice %arg3[%c0_i32_69, %c0_i32_70] : memref<256x128xf32, #tpu.memory_space<any>> -> memref<1x128xf32, #tpu.memory_space<any>>
    %c7_i32_71 = arith.constant 7 : i32
    %c0_i32_72 = arith.constant 0 : i32
    %88 = tpu.memref_slice %arg6[%c7_i32_71, %c0_i32_72] : memref<8x128xf32, #tpu.memory_space<vmem>> -> memref<1x128xf32, #tpu.memory_space<vmem>>
    %89 = tpu.memref_slice %arg7[%c7_i32_68] : memref<8x!tpu.dma_semaphore, #tpu.memory_space<semaphore_mem>> -> memref<1x!tpu.dma_semaphore, #tpu.memory_space<semaphore_mem>>
    %90 = tpu.memref_squeeze %89 : memref<1x!tpu.dma_semaphore, #tpu.memory_space<semaphore_mem>> -> memref<!tpu.dma_semaphore, #tpu.memory_space<semaphore_mem>>
    tpu.wait_dma2 semaphore(%90 : memref<!tpu.dma_semaphore, #tpu.memory_space<semaphore_mem>>) src(%87 : memref<1x128xf32, #tpu.memory_space<any>>) dst(%88 : memref<1x128xf32, #tpu.memory_space<vmem>>)
    %c0 = arith.constant 0 : index
    %c0_73 = arith.constant 0 : index
    %91 = vector.load %arg6[%c0, %c0_73] : memref<8x128xf32, #tpu.memory_space<vmem>>, vector<8x128xf32>
    %c0_74 = arith.constant 0 : index
    %c0_75 = arith.constant 0 : index
    %92 = vector.load %arg4[%c0_74, %c0_75] : memref<8x128xf32, #tpu.memory_space<vmem>>, vector<8x128xf32>
    %93 = arith.addf %91, %92 : vector<8x128xf32>
    %c0_76 = arith.constant 0 : index
    %c0_77 = arith.constant 0 : index
    %c0_78 = arith.constant 0 : index
    %94 = vector.load %arg5[%c0_76, %c0_77, %c0_78] : memref<1x8x128xf32, #tpu.memory_space<vmem>>, vector<1x8x128xf32>
    %95 = vector.shape_cast %94 : vector<1x8x128xf32> to vector<8x128xf32>
    %96 = vector.shape_cast %93 : vector<8x128xf32> to vector<1x8x128xf32>
    tpu.vector_store %arg5[%c0_76, %c0_77, %c0_78], %96 {strides = array<i32>} : memref<1x8x128xf32, #tpu.memory_space<vmem>>, vector<1x8x128xf32>,
    return
  }
  func.func @transform_1(%arg0: i32, %arg1: i32, %arg2: memref<16xi32, #tpu.memory_space<smem>>) -> (i32, i32) {
    %c0_i32 = arith.constant 0 : i32
    %c0_i32_0 = arith.constant 0 : i32
    return %arg1, %c0_i32 : i32, i32
  }
  func.func @transform_2(%arg0: i32, %arg1: i32, %arg2: memref<16xi32, #tpu.memory_space<smem>>) -> (i32, i32, i32) {
    %c0_i32 = arith.constant 0 : i32
    %c0_i32_0 = arith.constant 0 : i32
    return %arg0, %arg1, %c0_i32 : i32, i32, i32
  }
}

</mosaic_0001>

<bundles_post_ra>
// kernel: gpt2_embedding.1
= control target key start
LH: loop header
LB: loop body
LE: loop exit
PB: predicated region body
PF: predicated region fallthrough
CT: control target
= control target key end

     0   :  { %s887_s15 = smov [#allocation5]   ;;  %s1115_s0 = inlined_call_operand.vmem [shape: s32[16], index: 0, kind: input, shape index: {}]   ;;  %s1116_s1 = inlined_call_operand.hbm [shape: f32[256,128], index: 1, kind: input, shape index: {}]   ;;  %s1117_s2 = inlined_call_operand.hbm [shape: f32[64,128], index: 2, kind: input, shape index: {}]   ;;  %s1118_s3 = inlined_call_operand.hbm [shape: f32[2,8,128], index: 3, kind: output, shape index: {}]  }
   0x1   :  { %1121 = sst [smem:[#allocation40_spill]] %s1117_s2  ;;  %s9_s14 = sshll.u32 %s1115_s0, 4  ;;  %s10_s14 = int_to_ptr.vmem [resolvable:$true] %s9_s14 }
   0x2   :  { %12 = dma.vmem_to_smem %s10_s14, 16, %s887_s15, [#allocation4] }
   0x3   :  { %837 = dma.done.wait [#allocation4], 16 }
   0x4   :  { %838 = vsyncadd [#allocation4], 4294967280 }
   0x5   :  { %15 = sfence }
   0x6   :  { %16 = vsyncpa [#allocation7], 0 }
   0x7   :  { %17 = vsyncpa [#allocation8], 0 }
   0x8   :  { %19 = vsyncpa [#allocation8 + $0x1], 0  ;;  %s920_s16 = smov 0   ;;  %s922_s17 = smov 0  }
   0x9   :  { %s924_s18 = smov 0   ;;  %s926_s19 = smov 0  }
   0xa   :  { %s928_s20 = smov 0   ;;  %s930_s0 = smov 0  }
   0xb LB: > { %s456_s21 = sadd.s32 4294967295, %s885_s0   ;;  %s457_s22 = sadd.s32 4294967294, %s885_s0   ;;  %s885_s0 = sphi %s930_s0, %s25_s0   ;;  %s881_s20 = sphi %s928_s20, %s1133_s20   ;;  %s877_s19 = sphi %s926_s19, %s1132_s19   ;;  %s873_s18 = sphi %s924_s18, %s1131_s18   ;;  %s869_s17 = sphi %s922_s17, %s1130_s17   ;;  %s865_s16 = sphi %s920_s16, %s1129_s16  }
   0xc   : > { %s37_s23 = sadd.s32 1, %s881_s20  ;;  %s72_s24 = sadd.s32 1, %s873_s18 }
   0xd   : > { %p39_p0 = scmp.ge.s32.totalorder %s37_s23, 2  ;;  %p82_p1 = scmp.ne.s32.totalorder %s873_s18, %s869_s17 }
   0xe   : > { %p83_p2 = scmp.eq.s32.totalorder %s456_s21, 1  ;;  %p88_p3 = scmp.ne.s32.totalorder %s869_s17, %s865_s16 }
   0xf   : > { %s1135_s23 = smov (%p39_p0, %s37_s23), 0  ;;  %p89_p5 = scmp.eq.s32.totalorder %s457_s22, 1 }
  0x10   : > { %p960_p4 = por %p83_p2, %p82_p1  ;;  %s67_s26 = ssub.s32 %s881_s20, %s1135_s23 }
  0x11   : > { %p458_p6 = scmp.ge.s32.totalorder %s885_s0, 1  ;;  %p70_p7 = scmp.eq.s32.totalorder %s67_s26, 0 }
  0x12   : > { %p967_p8 = por %p89_p5, %p88_p3  ;;  %p96_p9 = scmp.lt.s32.totalorder %s885_s0, 3 }
  0x13   : > { %s973_s28 = scalar_select %p70_p7, %s873_s18, %s72_s24  }
  0x14   : > { %p97_p10 = pnand %p458_p6, %p96_p9  ;;  %p490_p11 = scmp.eq.s32.totalorder %s456_s21, 0 }
  0x15   : > { %s1124_s2 = sld [smem:[#allocation40_spill]]  ;;  %s888_s5 = smov [#allocation6]  }
  0x16   : > { %p482_p12 = pneg %p97_p10  ;;  %s112_s6 = sshll.u32 %s888_s5, 4  ;;  %s113_s6 = int_to_ptr.vmem [resolvable:$true] %s112_s6 }
  0x18   : > { %p483_p13 = pnand %p490_p11, %p482_p12  ;;  %125 = sbr.rel (%p97_p10) target bundleno = 170 (0xaa), region = 24 }
  0x1b   : > { %s110_s4 = sshll.u32 %s1124_s2, 4  ;;  %s111_s4 = int_to_ptr.hbm [resolvable:$true] %s110_s4 }
  0x1c   : > { %485 = dma.hbm_to_vmem [thread:$0]  (!%p483_p13), %s111_s4, 128, %s113_s6, [#allocation7]  }
  0x1d   : > { %840 = dma.done.wait (%p490_p11), [#allocation7], 128  }
  0x1e   : > { %842 = vsyncadd (%p490_p11), [#allocation7], 4294967168  ;;  %s1119_s7 = sand.u32 1, %s869_s17   ;;  %s980_s8 = sshll.u32 %s877_s19, 3 }
  0x1f   : > { %s984_s9 = sshll.u32 %s1119_s7, 3  ;;  %s144_s10 = sld [smem:[#allocation5 + %s980_s8]] }
  0x20   : > { %s889_s11 = smov [#allocation2]   ;;  %s159_s13 = sadd.s32 1, %s980_s8 }
  0x21   : > { %s155_s12 = sshll.u32 %s889_s11, 4  ;;  %s160_s14 = sld [smem:[#allocation5 + %s159_s13]]  ;;  %s156_s12 = int_to_ptr.vmem [resolvable:$true] %s155_s12 }
  0x22   : > { %s177_s15 = sadd.s32 2, %s980_s8  ;;  %s890_s21 = smov [#allocation2 + $0x1]  }
  0x23   : > { %s989_s22 = sshll.u32 %s890_s21, 4  ;;  %s178_s24 = sld [smem:[#allocation5 + %s177_s15]]  ;;  %s174_s22 = int_to_ptr.vmem [resolvable:$true] %s989_s22 }
  0x24   : > { %s891_s4 = smov [#allocation2 + $0x2]   ;;  %s1000_s21 = scalar_lea.hbm %s1116_s1, 256 }
  0x25   : > { %s145_s29 = scalar_lea.hbm %s1116_s1, %s144_s10  ;;  %s995_s5 = sshll.u32 %s891_s4, 4  ;;  %s192_s5 = int_to_ptr.vmem [resolvable:$true] %s995_s5 }
  0x26   : > { %s153_s30 = sshll.u32 %s145_s29, 4  ;;  %s154_s30 = int_to_ptr.hbm [resolvable:$true] %s153_s30 }
  0x27   : > { %s593_s6 = sshra.s32 %s154_s30, 4  ;;  %s594_s6 = int_to_ptr.hbm [resolvable:$true] %s593_s6 }
  0x28   : > { %s595_s11 = scalar_lea.hbm %s594_s6, 1  ;;  %p598_p1 = scmp.lt.s32.totalorder %s594_s6, %s1116_s1 }
  0x29   : > { %p596_p0 = scmp.ne.s32.totalorder %s594_s6, %s595_s11  ;;  %p599_p2 = scmp.lt.s32.totalorder %s1000_s21, %s595_s11 }
  0x2b   : > { %p600_p3 = por %p599_p2, %p598_p1 }
  0x2d   : > { %p601_p5 = pnand %p600_p3, %p596_p0 }
  0x2f   : > { %604 = shalt.err (!%p601_p5)  }
  0x30   : > { %158 = dma.hbm_to_vmem [thread:$0]  %s154_s30, 16, %s156_s12, [#allocation3] }
  0x31   : > { %s161_s26 = scalar_lea.hbm %s1116_s1, %s160_s14  ;;  %s179_s13 = scalar_lea.hbm %s1116_s1, %s178_s24 }
  0x32   : > { %s171_s7 = sshll.u32 %s161_s26, 4  ;;  %s189_s2 = sshll.u32 %s179_s13, 4  ;;  %s172_s7 = int_to_ptr.hbm [resolvable:$true] %s171_s7  ;;  %s190_s2 = int_to_ptr.hbm [resolvable:$true] %s189_s2 }
  0x33   : > { %s617_s6 = sshra.s32 %s172_s7, 4  ;;  %s618_s6 = int_to_ptr.hbm [resolvable:$true] %s617_s6 }
  0x34   : > { %s619_s11 = scalar_lea.hbm %s618_s6, 1  ;;  %p622_p7 = scmp.lt.s32.totalorder %s618_s6, %s1116_s1 }
  0x35   : > { %p620_p6 = scmp.ne.s32.totalorder %s618_s6, %s619_s11  ;;  %p623_p9 = scmp.lt.s32.totalorder %s1000_s21, %s619_s11 }
  0x37   : > { %p624_p10 = por %p623_p9, %p622_p7 }
  0x39   : > { %p625_p11 = pnand %p624_p10, %p620_p6 }
  0x3b   : > { %628 = shalt.err (!%p625_p11)  }
  0x3c   : > { %176 = dma.hbm_to_vmem [thread:$0]  %s172_s7, 16, %s174_s22, [#allocation3 + $0x1] }
  0x3d   : > { %s195_s14 = sadd.s32 3, %s980_s8  ;;  %s641_s24 = sshra.s32 %s190_s2, 4  ;;  %s642_s24 = int_to_ptr.hbm [resolvable:$true] %s641_s24 }
  0x3e   : > { %s643_s30 = scalar_lea.hbm %s642_s24, 1  ;;  %p646_p13 = scmp.lt.s32.totalorder %s642_s24, %s1116_s1 }
  0x3f   : > { %p644_p12 = scmp.ne.s32.totalorder %s642_s24, %s643_s30  ;;  %p647_p0 = scmp.lt.s32.totalorder %s1000_s21, %s643_s30 }
  0x41   : > { %p648_p1 = por %p647_p0, %p646_p13 }
  0x43   : > { %p649_p2 = pnand %p648_p1, %p644_p12 }
  0x45   : > { %652 = shalt.err (!%p649_p2)  }
  0x46   : > { %194 = dma.hbm_to_vmem [thread:$0]  %s190_s2, 16, %s192_s5, [#allocation3 + $0x2] }
  0x47   : > { %s196_s26 = sld [smem:[#allocation5 + %s195_s14]]  ;;  %s892_s29 = smov [#allocation2 + $0x3]  }
  0x48   : > { %s209_s22 = sshll.u32 %s892_s29, 4  ;;  %s213_s7 = sadd.s32 4, %s980_s8  ;;  %s210_s22 = int_to_ptr.vmem [resolvable:$true] %s209_s22 }
  0x49   : > { %s214_s4 = sld [smem:[#allocation5 + %s213_s7]]  ;;  %s231_s13 = sadd.s32 5, %s980_s8 }
  0x4a   : > { %s893_s6 = smov [#allocation2 + $0x4]   ;;  %s232_s15 = sld [smem:[#allocation5 + %s231_s13]] }
  0x4b   : > { %s1026_s11 = sshll.u32 %s893_s6, 4  ;;  %s894_s2 = smov [#allocation2 + $0x5]  }
  0x4c   : > { %1125 = sst [smem:[#allocation39_spill]] %s1026_s11  ;;  %s1032_s30 = sshll.u32 %s894_s2, 4  ;;  %s246_s30 = int_to_ptr.vmem [resolvable:$true] %s1032_s30 }
  0x4d   : > { %s197_s5 = scalar_lea.hbm %s1116_s1, %s196_s26 }
  0x4e   : > { %s207_s14 = sshll.u32 %s197_s5, 4  ;;  %s208_s14 = int_to_ptr.hbm [resolvable:$true] %s207_s14 }
  0x4f   : > { %s215_s29 = scalar_lea.hbm %s1116_s1, %s214_s4  ;;  %s665_s7 = sshra.s32 %s208_s14, 4  ;;  %s666_s7 = int_to_ptr.hbm [resolvable:$true] %s665_s7 }
  0x50   : > { %s667_s6 = scalar_lea.hbm %s666_s7, 1  ;;  %p670_p5 = scmp.lt.s32.totalorder %s666_s7, %s1116_s1 }
  0x51   : > { %p668_p3 = scmp.ne.s32.totalorder %s666_s7, %s667_s6  ;;  %p671_p6 = scmp.lt.s32.totalorder %s1000_s21, %s667_s6 }
  0x53   : > { %p672_p7 = por %p671_p6, %p670_p5 }
  0x55   : > { %p673_p9 = pnand %p672_p7, %p668_p3 }
  0x57   : > { %676 = shalt.err (!%p673_p9)  }
  0x58   : > { %212 = dma.hbm_to_vmem [thread:$0]  %s208_s14, 16, %s210_s22, [#allocation3 + $0x3] }
  0x59   : > { %s225_s26 = sshll.u32 %s215_s29, 4  ;;  %s233_s5 = scalar_lea.hbm %s1116_s1, %s232_s15  ;;  %s226_s26 = int_to_ptr.hbm [resolvable:$true] %s225_s26 }
  0x5a   : > { %s243_s4 = sshll.u32 %s233_s5, 4  ;;  %s689_s2 = sshra.s32 %s226_s26, 4  ;;  %s690_s2 = int_to_ptr.hbm [resolvable:$true] %s689_s2  ;;  %s244_s4 = int_to_ptr.hbm [resolvable:$true] %s243_s4 }
  0x5b   : > { %s691_s10 = scalar_lea.hbm %s690_s2, 1  ;;  %p694_p11 = scmp.lt.s32.totalorder %s690_s2, %s1116_s1 }
  0x5c   : > { %p692_p10 = scmp.ne.s32.totalorder %s690_s2, %s691_s10  ;;  %p695_p12 = scmp.lt.s32.totalorder %s1000_s21, %s691_s10 }
  0x5e   : > { %p696_p13 = por %p695_p12, %p694_p11 }
  0x60   : > { %p697_p0 = pnand %p696_p13, %p692_p10 }
  0x62   : > { %700 = shalt.err (!%p697_p0)  }
  0x63   : > { %s1126_s22 = sld [smem:[#allocation39_spill]]  ;;  %s249_s15 = sadd.s32 6, %s980_s8 }
  0x64   : > { %s713_s29 = sshra.s32 %s244_s4, 4  ;;  %s714_s29 = int_to_ptr.hbm [resolvable:$true] %s713_s29 }
  0x65   : > { %s715_s7 = scalar_lea.hbm %s714_s29, 1  ;;  %p718_p2 = scmp.lt.s32.totalorder %s714_s29, %s1116_s1 }
  0x66   : > { %p716_p1 = scmp.ne.s32.totalorder %s714_s29, %s715_s7  ;;  %p719_p3 = scmp.lt.s32.totalorder %s1000_s21, %s715_s7 }
  0x68   : > { %p720_p5 = por %p719_p3, %p718_p2 }
  0x69   : > { %s1127_s14 = int_to_ptr.vmem [resolvable:$true] %s1126_s22 }
  0x6a   : > { %230 = dma.hbm_to_vmem [thread:$0]  %s226_s26, 16, %s1127_s14, [#allocation3 + $0x4] }
  0x6b   : > { %p721_p6 = pnand %p720_p5, %p716_p1 }
  0x6d   : > { %724 = shalt.err (!%p721_p6)  }
  0x6e   : > { %248 = dma.hbm_to_vmem [thread:$0]  %s244_s4, 16, %s246_s30, [#allocation3 + $0x5] }
  0x6f   : > { %s250_s12 = sld [smem:[#allocation5 + %s249_s15]]  ;;  %s267_s26 = sadd.s32 7, %s980_s8 }
  0x70   : > { %s268_s24 = sld [smem:[#allocation5 + %s267_s26]]  ;;  %s895_s5 = smov [#allocation2 + $0x6]  }
  0x71   : > { %s263_s2 = sshll.u32 %s895_s5, 4  ;;  %s896_s10 = smov [#allocation2 + $0x7]   ;;  %s264_s2 = int_to_ptr.vmem [resolvable:$true] %s263_s2 }
  0x72   : > { %s1059_s19 = sshll.u32 %s896_s10, 4  ;;  %s282_s19 = int_to_ptr.vmem [resolvable:$true] %s1059_s19 }
  0x75   : > { %s251_s14 = scalar_lea.hbm %s1116_s1, %s250_s12 }
  0x76   : > { %s261_s29 = sshll.u32 %s251_s14, 4  ;;  %s269_s4 = scalar_lea.hbm %s1116_s1, %s268_s24  ;;  %s262_s29 = int_to_ptr.hbm [resolvable:$true] %s261_s29 }
  0x77   : > { %s737_s15 = sshra.s32 %s262_s29, 4  ;;  %s738_s15 = int_to_ptr.hbm [resolvable:$true] %s737_s15 }
  0x78   : > { %s739_s6 = scalar_lea.hbm %s738_s15, 1  ;;  %p742_p9 = scmp.lt.s32.totalorder %s738_s15, %s1116_s1 }
  0x79   : > { %p740_p7 = scmp.ne.s32.totalorder %s738_s15, %s739_s6  ;;  %p743_p10 = scmp.lt.s32.totalorder %s1000_s21, %s739_s6 }
  0x7b   : > { %p744_p11 = por %p743_p10, %p742_p9 }
  0x7d   : > { %p745_p12 = pnand %p744_p11, %p740_p7 }
  0x7f   : > { %748 = shalt.err (!%p745_p12)  }
  0x80   : > { %266 = dma.hbm_to_vmem [thread:$0]  %s262_s29, 16, %s264_s2, [#allocation3 + $0x6] }
  0x81   : > { %s279_s12 = sshll.u32 %s269_s4, 4  ;;  %s280_s12 = int_to_ptr.hbm [resolvable:$true] %s279_s12 }
  0x82   : > { %s761_s5 = sshra.s32 %s280_s12, 4  ;;  %s762_s5 = int_to_ptr.hbm [resolvable:$true] %s761_s5 }
  0x83   : > { %s763_s10 = scalar_lea.hbm %s762_s5, 1  ;;  %p766_p0 = scmp.lt.s32.totalorder %s762_s5, %s1116_s1 }
  0x84   : > { %p764_p13 = scmp.ne.s32.totalorder %s762_s5, %s763_s10  ;;  %p767_p1 = scmp.lt.s32.totalorder %s1000_s21, %s763_s10 }
  0x86   : > { %p768_p2 = por %p767_p1, %p766_p0 }
  0x88   : > { %p769_p3 = pnand %p768_p2, %p764_p13 }
  0x8a   : > { %772 = shalt.err (!%p769_p3)  }
  0x8b   : > { %284 = dma.hbm_to_vmem [thread:$0]  %s280_s12, 16, %s282_s19, [#allocation3 + $0x7] }
  0x8c   : > { %s140_s22 = scalar_lea.vmem [#allocation9], %s984_s9 }
  0x8d   : > { %843 = dma.done.wait [#allocation3], 16 }
  0x8e   : > { %844 = vsyncadd [#allocation3], 4294967280 }
  0x8f   : > { %845 = dma.done.wait [#allocation3 + $0x1], 16 }
  0x90   : > { %846 = vsyncadd [#allocation3 + $0x1], 4294967280 }
  0x91   : > { %847 = dma.done.wait [#allocation3 + $0x2], 16 }
  0x92   : > { %848 = vsyncadd [#allocation3 + $0x2], 4294967280 }
  0x93   : > { %849 = dma.done.wait [#allocation3 + $0x3], 16 }
  0x94   : > { %850 = vsyncadd [#allocation3 + $0x3], 4294967280 }
  0x95   : > { %851 = dma.done.wait [#allocation3 + $0x4], 16 }
  0x96   : > { %852 = vsyncadd [#allocation3 + $0x4], 4294967280 }
  0x97   : > { %853 = dma.done.wait [#allocation3 + $0x5], 16 }
  0x98   : > { %854 = vsyncadd [#allocation3 + $0x5], 4294967280 }
  0x99   : > { %855 = dma.done.wait [#allocation3 + $0x6], 16 }
  0x9a   : > { %856 = vsyncadd [#allocation3 + $0x6], 4294967280 }
  0x9b   : > { %857 = dma.done.wait [#allocation3 + $0x7], 16 }
  0x9c   : > { %858 = vsyncadd [#allocation3 + $0x7], 4294967280  ;;  %s318_s9 = scalar_lea.hbm %s1118_s3, %s980_s8  ;;  %s320_s19 = sshll.u32 %s140_s22, 4  ;;  %v302_v0 = vld [vmem:[#allocation2] sm:$0xff]  ;;  %v303_v1 = vld [vmem:[#allocation6] sm:$0xff]  ;;  %s321_s19 = int_to_ptr.vmem [resolvable:$true] %s320_s19 }
  0x9d   : > { %s322_s14 = sshll.u32 %s318_s9, 4  ;;  %v304_v2 = vadd.f32 %v303_v1, %v302_v0  ;;  %s1128_s29 = sand.u32 1, %s869_s17   ;;  %s323_s14 = int_to_ptr.hbm [resolvable:$true] %s322_s14 }
  0x9e   : > { %s307_s7 = scalar_lea.sflag [#allocation8], %s1128_s29  ;;  %s799_s30 = sshra.s32 %s323_s14, 4  ;;  %s800_s30 = int_to_ptr.hbm [resolvable:$true] %s799_s30 }
  0x9f   : > { %305 = vst [vmem:[%s140_s22] sm:$0xff] %v304_v2  ;;  %s801_s4 = scalar_lea.hbm %s800_s30, 8  ;;  %s805_s8 = scalar_lea.hbm %s1118_s3, 16 }
  0xa0   : > { %p802_p5 = scmp.ne.s32.totalorder %s800_s30, %s801_s4  ;;  %p806_p9 = scmp.lt.s32.totalorder %s800_s30, %s1118_s3 }
  0xa1   : > { %p807_p10 = scmp.lt.s32.totalorder %s805_s8, %s801_s4 }
  0xa2   : > { %p803_p6 = pnand %p802_p5, %p960_p4 }
  0xa3   : > { %p808_p11 = por %p807_p10, %p806_p9 }
  0xa4   : > { %p804_p7 = pneg %p803_p6 }
  0xa6   : > { %p809_p12 = pnand %p808_p11, %p804_p7 }
  0xa8   : > { %812 = shalt.err (!%p809_p12)
}
  0xa9   : > { %480 = dma.vmem_to_hbm [thread:$0]  (%p960_p4), %s321_s19, 128, %s323_s14, %s307_s7  }
  0xaa PF: > { %p492_p13 = scmp.ge.s32.totalorder %s885_s0, 2  ;;  %s334_s12 = sand.u32 1, %s865_s16  }
  0xab   : > { %s335_s5 = scalar_lea.sflag [#allocation8], %s334_s12 }
  0xac   : > { %p487_p0 = pnand %p492_p13, %p967_p8 }
  0xae   : > { %p488_p1 = pneg %p487_p0 }
  0xb0   : > { %860 = dma.done.wait (%p488_p1), %s335_s5, 128  }
  0xb1   : > { %862 = vsyncadd (%p488_p1), %s335_s5, 4294967168  ;;  %s25_s0 = sadd.s32 1, %s885_s0   ;;  %s1129_s16 = smov %s869_s17 }
  0xb2   : > { %p22_p2 = scmp.ge.s32.totalorder %s25_s0, 4   ;;  %s1130_s17 = smov %s873_s18 }
  0xb3   : > { %s1131_s18 = smov %s973_s28  ;;  %s1132_s19 = smov %s881_s20 }
  0xb4   : > { %s1133_s20 = smov %s1135_s23  ;;  %24 = sbr.rel (!%p22_p2) target bundleno = 11 (0xb), region = 123 }
  0xb9   :  { %341 = vsyncpa [#allocation7], 1 }
  0xba   :  { %343 = vsyncpa [#allocation7 + $0x1], 1 }
  0xbb   :  { %344 = vsyncpa [#allocation8], 1 }
  0xbc   :  { %346 = vsyncpa [#allocation8 + $0x1], 1 }
  0xbd   :  { %347 = vsyncmov [#allocation3] }
  0xc0   :  { %s348_s25 = vpop.sfrf %347 }
  0xc1   :  { %p468_p4 = scmp.ne.s32.totalorder %s348_s25, 0 }
  0xc3   :  { %352 = shalt.err (%p468_p4)  }
  0xc4   :  { %354 = vsyncmov [#allocation3 + $0x1] }
  0xc7   :  { %s355_s27 = vpop.sfrf %354 }
  0xc8   :  { %p469_p8 = scmp.ne.s32.totalorder %s355_s27, 0 }
  0xca   :  { %359 = shalt.err (%p469_p8)  }
  0xcb   :  { %361 = vsyncmov [#allocation3 + $0x2] }
  0xce   :  { %s362_s28 = vpop.sfrf %361 }
  0xcf   :  { %p470_p3 = scmp.ne.s32.totalorder %s362_s28, 0 }
  0xd1   :  { %366 = shalt.err (%p470_p3)  }
  0xd2   :  { %368 = vsyncmov [#allocation3 + $0x3] }
  0xd5   :  { %s369_s23 = vpop.sfrf %368 }
  0xd6   :  { %p471_p5 = scmp.ne.s32.totalorder %s369_s23, 0 }
  0xd8   :  { %373 = shalt.err (%p471_p5)  }
  0xd9   :  { %375 = vsyncmov [#allocation3 + $0x4] }
  0xdc   :  { %s376_s1 = vpop.sfrf %375 }
  0xdd   :  { %p472_p6 = scmp.ne.s32.totalorder %s376_s1, 0 }
  0xdf   :  { %380 = shalt.err (%p472_p6)  }
  0xe0   :  { %382 = vsyncmov [#allocation3 + $0x5] }
  0xe3   :  { %s383_s3 = vpop.sfrf %382 }
  0xe4   :  { %p473_p7 = scmp.ne.s32.totalorder %s383_s3, 0 }
  0xe6   :  { %387 = shalt.err (%p473_p7)  }
  0xe7   :  { %389 = vsyncmov [#allocation3 + $0x6] }
  0xea   :  { %s390_s16 = vpop.sfrf %389 }
  0xeb   :  { %p474_p9 = scmp.ne.s32.totalorder %s390_s16, 0 }
  0xed   :  { %394 = shalt.err (%p474_p9)  }
  0xee   :  { %396 = vsyncmov [#allocation3 + $0x7] }
  0xf1   :  { %s397_s17 = vpop.sfrf %396 }
  0xf2   :  { %p475_p10 = scmp.ne.s32.totalorder %s397_s17, 0 }
  0xf4   :  { %401 = shalt.err (%p475_p10)  }

</bundles_post_ra>
